<compile_context>
chip_gen: v7x
topology: tpu7x:2x2x1
jax: 0.10.0
libtpu: 0.0.40
codegen_flags: <defaults>
</compile_context>

<pallas_src>
import functools

import jax
import jax.numpy as jnp
from jax.experimental import pallas as pl
from jax.experimental.pallas import tpu as pltpu


def value_net_kernel(xT_ref, w1_ref, w2_ref, b2_ref, w3_ref, b3_ref, o_ref,
                     *, bf16_epilogue):
    # xT_ref: (10, TB) bf16 (batch on lanes, last row is ones for the b1 fold),
    # weights bf16, b2 f32 (64,1), b3 f32 (1,1) in SMEM, out (1, TB) f32.
    act = jnp.bfloat16 if bf16_epilogue else jnp.float32

    # Layer 1: (64,10) @ (10,TB) -> (64,TB); bias already folded into W1.
    h1 = jnp.dot(w1_ref[...], xT_ref[...], preferred_element_type=jnp.float32)
    h1 = jnp.maximum(h1.astype(act), 0.0).astype(jnp.bfloat16)

    # Layer 2: (64,64) @ (64,TB) -> (64,TB).
    h2 = jnp.dot(w2_ref[...], h1, preferred_element_type=jnp.float32)
    h2 = jnp.maximum(h2.astype(act) + b2_ref[...].astype(act), 0.0)
    h2 = h2.astype(jnp.bfloat16)

    # Layer 3: (1,64) @ (64,TB) -> (1,TB); scalar bias from SMEM; tanh in f32.
    h3 = jnp.dot(w3_ref[...], h2, preferred_element_type=jnp.float32) + b3_ref[0, 0]
    o_ref[...] = jnp.tanh(h3).astype(o_ref.dtype)            # lane-dense store


def _round_up(x, m):
    return ((x + m - 1) // m) * m


def _choose_tile(B, desired_tb):
    """Pick a lane tile (multiple of 256) and padded batch with >=2 tiles when possible."""
    b256 = _round_up(max(B, 1), 256)
    tb = min(_round_up(desired_tb, 256), b256)
    # v7x megacore: keep at least 2 batch tiles when the batch is big enough.
    if b256 // tb < 2 and b256 >= 512:
        tb = max(256, ((b256 // 2) // 256) * 256)
    b_pad = _round_up(B, tb)
    return tb, b_pad


@functools.partial(jax.jit, static_argnames=("desired_tb", "bf16_epilogue"))
def value_net_forward(x, params, *, desired_tb=8192, bf16_epilogue=True):
    """x: (B, 9) float32. Returns (B, 1) float32, matching ValueNet.forward."""
    w1a, w2, b2, w3, b3 = params
    B = x.shape[0]
    tb, b_pad = _choose_tile(B, desired_tb)

    # Wrapper layout pass: append the ones row (b1 fold), transpose so batch is
    # on lanes, pad the lane axis to a multiple of tb, cast to bf16.
    xT = jnp.concatenate([x.T, jnp.ones((1, B), x.dtype)], axis=0)        # (10, B)
    xT = jnp.pad(xT, ((0, 0), (0, b_pad - B))).astype(jnp.bfloat16)       # (10, b_pad)

    # Weights/biases: DMA'd once, stay resident in VMEM across the batch grid.
    resident = lambda a: pl.BlockSpec(a.shape, lambda i, _n=a.ndim: (0,) * _n)

    kernel = functools.partial(value_net_kernel, bf16_epilogue=bf16_epilogue)

    out = pl.pallas_call(
        kernel,
        out_shape=jax.ShapeDtypeStruct((1, b_pad), jnp.float32),
        grid_spec=pltpu.PrefetchScalarGridSpec(
            num_scalar_prefetch=0,
            grid=(b_pad // tb,),
            in_specs=[
                pl.BlockSpec((10, tb), lambda i: (0, i)),                 # x tile, pipelined
                resident(w1a),
                resident(w2), resident(b2),
                resident(w3),
                pl.BlockSpec(memory_space=pltpu.MemorySpace.SMEM),        # b3 scalar
            ],
            out_specs=pl.BlockSpec((1, tb), lambda i: (0, i)),            # lane-dense output
        ),
        compiler_params=pltpu.CompilerParams(
            dimension_semantics=("parallel",),       # batch tiles shard across v7x's 2 TCs
            vmem_limit_bytes=32 * 1024 * 1024,       # ~0.9 KiB/lane -> covers tb up to ~32K
        ),
    )(xT, w1a, w2, b2, w3, b3)

    return out[0, :B].reshape(B, 1)


def init_params(key):
    # PyTorch nn.Linear default init: U(-1/sqrt(fan_in), 1/sqrt(fan_in)) for W and b.
    # Weights kept in PyTorch's (out, in) layout (kernel computes W @ x^T), cast to
    # bf16 for the MXU. b1 is folded into W1 as an extra column; b2 stays f32 (64,1);
    # b3 is a (1,1) f32 scalar that lives in SMEM inside the kernel.
    def linear(key, fan_in, fan_out):
        kw, kb = jax.random.split(key)
        bound = 1.0 / jnp.sqrt(jnp.float32(fan_in))
        w = jax.random.uniform(kw, (fan_out, fan_in), jnp.float32, -bound, bound)
        b = jax.random.uniform(kb, (fan_out, 1), jnp.float32, -bound, bound)
        return w, b

    k1, k2, k3 = jax.random.split(key, 3)
    w1, b1 = linear(k1, 9, 64)
    w2, b2 = linear(k2, 64, 64)
    w3, b3 = linear(k3, 64, 1)
    w1a = jnp.concatenate([w1, b1], axis=1).astype(jnp.bfloat16)          # (64, 10)
    return (w1a, w2.astype(jnp.bfloat16), b2, w3.astype(jnp.bfloat16), b3)


def reference_forward_mixed(x, params, *, bf16_epilogue):
    # Same mixed-precision math as the kernel (bf16 MXU inputs, f32 accumulate,
    # epilogue precision matching the kernel's act dtype).
    w1a, w2, b2, w3, b3 = params
    act = jnp.bfloat16 if bf16_epilogue else jnp.float32
    xT = jnp.concatenate([x.T, jnp.ones((1, x.shape[0]), x.dtype)], axis=0)
    xT = xT.astype(jnp.bfloat16)
    h1 = jnp.dot(w1a, xT, preferred_element_type=jnp.float32)
    h1 = jnp.maximum(h1.astype(act), 0.0).astype(jnp.bfloat16)
    h2 = jnp.dot(w2, h1, preferred_element_type=jnp.float32)
    h2 = jnp.maximum(h2.astype(act) + b2.astype(act), 0.0).astype(jnp.bfloat16)
    h3 = jnp.dot(w3, h2, preferred_element_type=jnp.float32) + b3
    return jnp.tanh(h3).T                                                 # (B, 1)


def reference_forward_f32(x, params):
    # Pure-f32 reference of the original PyTorch semantics (sanity check only).
    w1a, w2, b2, w3, b3 = params
    w1 = w1a[:, :9].astype(jnp.float32)
    b1 = w1a[:, 9:10].astype(jnp.float32)
    h = jnp.maximum(x @ w1.T + b1.T, 0.0)
    h = jnp.maximum(h @ w2.astype(jnp.float32).T + b2.T, 0.0)
    return jnp.tanh(h @ w3.astype(jnp.float32).T + b3.T)


def _is_v5():
    try:
        return "v5" in jax.devices()[0].device_kind.lower()
    except Exception:
        return False


if __name__ == "__main__":
    key = jax.random.PRNGKey(0)
    kx, kp = jax.random.split(key)
    params = init_params(kp)

    # bf16 bias+ReLU epilogues on v6e/v7x; keep f32 epilogues on v5e (no bf16 VALU).
    bf16_ep = not _is_v5()

    # Small batch (B=8 -> single 256-wide tile) and a larger one (B=1000 -> two
    # 512-wide tiles) to exercise both the adaptive-tiling and padding paths.
    for B in (8, 1000):
        x = jax.random.normal(jax.random.fold_in(kx, B), (B, 9), jnp.float32)
        out = jax.block_until_ready(
            value_net_forward(x, params, bf16_epilogue=bf16_ep))
        assert out.shape == (B, 1)

        ref_mixed = reference_forward_mixed(x, params, bf16_epilogue=bf16_ep)
        ref_f32 = reference_forward_f32(x, params)
        assert jnp.allclose(out, ref_mixed, atol=5e-3, rtol=5e-3), (
            B, out[:4], ref_mixed[:4])
        assert jnp.allclose(out, ref_f32, atol=5e-2, rtol=5e-2), (
            B, out[:4], ref_f32[:4])

    print("KERNEL_OK")
</pallas_src>

<mosaic_0001>
module attributes {stable_mosaic.version = 11 : i64} {
  func.func @value_net_kernel(%arg0: i32, %arg1: memref<10x256xbf16, #tpu.memory_space<vmem>>, %arg2: memref<64x10xbf16, #tpu.memory_space<vmem>>, %arg3: memref<64x64xbf16, #tpu.memory_space<vmem>>, %arg4: memref<64x1xf32, #tpu.memory_space<vmem>>, %arg5: memref<1x64xbf16, #tpu.memory_space<vmem>>, %arg6: memref<1x1xf32, #tpu.memory_space<smem>>, %arg7: memref<1x256xf32, #tpu.memory_space<vmem>>) attributes {dimension_semantics = [#tpu.dimension_semantics<parallel>], iteration_bounds = array<i64: 1>, scalar_prefetch = 0 : i64, scratch_operands = 0 : i64, tpu.core_type = #tpu.core_type<tc>, window_params = [{transform_indices = @transform_0, window_bounds = array<i64: 10, 256>}, {pipeline_mode = #tpu.pipeline_mode<synchronous>, transform_indices = @transform_1, window_bounds = array<i64: 64, 10>}, {pipeline_mode = #tpu.pipeline_mode<synchronous>, transform_indices = @transform_2, window_bounds = array<i64: 64, 64>}, {pipeline_mode = #tpu.pipeline_mode<synchronous>, transform_indices = @transform_3, window_bounds = array<i64: 64, 1>}, {pipeline_mode = #tpu.pipeline_mode<synchronous>, transform_indices = @transform_4, window_bounds = array<i64: 1, 64>}, {transform_indices = @transform_5, window_bounds = array<i64: 1, 1>}, {transform_indices = @transform_6, window_bounds = array<i64: 1, 256>}]} {
    %c0 = arith.constant 0 : index
    %c0_0 = arith.constant 0 : index
    %0 = vector.load %arg2[%c0, %c0_0] : memref<64x10xbf16, #tpu.memory_space<vmem>>, vector<64x10xbf16>
    %c0_1 = arith.constant 0 : index
    %c0_2 = arith.constant 0 : index
    %1 = vector.load %arg1[%c0_1, %c0_2] : memref<10x256xbf16, #tpu.memory_space<vmem>>, vector<10x256xbf16>
    %cst = arith.constant dense<0.000000e+00> : vector<64x256xf32>
    %2 = tpu.matmul %0, %1, %cst {dimension_numbers = #tpu.dot_dimension_numbers<[1], [0], [0], [1], [0, 0, 1, 1], [], []>} : vector<64x10xbf16>, vector<10x256xbf16>, vector<64x256xf32> -> vector<64x256xf32>
    %3 = arith.truncf %2 : vector<64x256xf32> to vector<64x256xbf16>
    %cst_3 = arith.constant 0.000000e+00 : bf16
    %4 = vector.broadcast %cst_3 : bf16 to vector<64x256xbf16>
    %5 = arith.maximumf %3, %4 : vector<64x256xbf16>
    %c0_4 = arith.constant 0 : index
    %c0_5 = arith.constant 0 : index
    %6 = vector.load %arg3[%c0_4, %c0_5] : memref<64x64xbf16, #tpu.memory_space<vmem>>, vector<64x64xbf16>
    %cst_6 = arith.constant dense<0.000000e+00> : vector<64x256xf32>
    %7 = tpu.matmul %6, %5, %cst_6 {dimension_numbers = #tpu.dot_dimension_numbers<[1], [0], [0], [1], [0, 0, 1, 1], [], []>} : vector<64x64xbf16>, vector<64x256xbf16>, vector<64x256xf32> -> vector<64x256xf32>
    %8 = arith.truncf %7 : vector<64x256xf32> to vector<64x256xbf16>
    %c0_7 = arith.constant 0 : index
    %c0_8 = arith.constant 0 : index
    %9 = vector.load %arg4[%c0_7, %c0_8] : memref<64x1xf32, #tpu.memory_space<vmem>>, vector<64x1xf32>
    %10 = arith.truncf %9 : vector<64x1xf32> to vector<64x1xbf16>
    %11 = vector.broadcast %10 : vector<64x1xbf16> to vector<64x256xbf16>
    %12 = arith.addf %8, %11 : vector<64x256xbf16>
    %cst_9 = arith.constant 0.000000e+00 : bf16
    %13 = vector.broadcast %cst_9 : bf16 to vector<64x256xbf16>
    %14 = arith.maximumf %12, %13 : vector<64x256xbf16>
    %c0_10 = arith.constant 0 : index
    %c0_11 = arith.constant 0 : index
    %15 = vector.load %arg5[%c0_10, %c0_11] : memref<1x64xbf16, #tpu.memory_space<vmem>>, vector<1x64xbf16>
    %cst_12 = arith.constant dense<0.000000e+00> : vector<1x256xf32>
    %16 = tpu.matmul %15, %14, %cst_12 {dimension_numbers = #tpu.dot_dimension_numbers<[1], [0], [0], [1], [0, 0, 1, 1], [], []>} : vector<1x64xbf16>, vector<64x256xbf16>, vector<1x256xf32> -> vector<1x256xf32>
    %c0_13 = arith.constant 0 : index
    %c0_14 = arith.constant 0 : index
    %17 = memref.load %arg6[%c0_13, %c0_14] : memref<1x1xf32, #tpu.memory_space<smem>>
    %18 = vector.broadcast %17 : f32 to vector<1x256xf32>
    %19 = arith.addf %16, %18 : vector<1x256xf32>
    %20 = math.tanh %19 : vector<1x256xf32>
    %c0_15 = arith.constant 0 : index
    %c0_16 = arith.constant 0 : index
    %21 = vector.load %arg7[%c0_15, %c0_16] : memref<1x256xf32, #tpu.memory_space<vmem>>, vector<1x256xf32>
    tpu.vector_store %arg7[%c0_15, %c0_16], %20 {strides = array<i32>} : memref<1x256xf32, #tpu.memory_space<vmem>>, vector<1x256xf32>,
    return
  }
  func.func @transform_0(%arg0: i32) -> (i32, i32) {
    %c0_i32 = arith.constant 0 : i32
    %c0_i32_0 = arith.constant 0 : i32
    return %c0_i32, %arg0 : i32, i32
  }
  func.func @transform_1(%arg0: i32) -> (i32, i32) {
    %c0_i32 = arith.constant 0 : i32
    %c0_i32_0 = arith.constant 0 : i32
    %c0_i32_1 = arith.constant 0 : i32
    return %c0_i32, %c0_i32_0 : i32, i32
  }
  func.func @transform_2(%arg0: i32) -> (i32, i32) {
    %c0_i32 = arith.constant 0 : i32
    %c0_i32_0 = arith.constant 0 : i32
    %c0_i32_1 = arith.constant 0 : i32
    return %c0_i32, %c0_i32_0 : i32, i32
  }
  func.func @transform_3(%arg0: i32) -> (i32, i32) {
    %c0_i32 = arith.constant 0 : i32
    %c0_i32_0 = arith.constant 0 : i32
    %c0_i32_1 = arith.constant 0 : i32
    return %c0_i32, %c0_i32_0 : i32, i32
  }
  func.func @transform_4(%arg0: i32) -> (i32, i32) {
    %c0_i32 = arith.constant 0 : i32
    %c0_i32_0 = arith.constant 0 : i32
    %c0_i32_1 = arith.constant 0 : i32
    return %c0_i32, %c0_i32_0 : i32, i32
  }
  func.func @transform_5(%arg0: i32) -> (i32, i32) {
    %c0_i32 = arith.constant 0 : i32
    %c0_i32_0 = arith.constant 0 : i32
    %c0_i32_1 = arith.constant 0 : i32
    return %c0_i32, %c0_i32_0 : i32, i32
  }
  func.func @transform_6(%arg0: i32) -> (i32, i32) {
    %c0_i32 = arith.constant 0 : i32
    %c0_i32_0 = arith.constant 0 : i32
    return %c0_i32, %arg0 : i32, i32
  }
}

</mosaic_0001>

<bundles_post_ra>
// kernel: value_net_forward.1
= control target key start
LH: loop header
LB: loop body
LE: loop exit
PB: predicated region body
PF: predicated region fallthrough
CT: control target
= control target key end

     0   :  { %vm76_vm0 = vcmask 1044480   ;;  %v457_v1 = vmov 0   ;;  %vm63_vm1 = vcmask 80896   ;;  %vm200_vm2 = vcmask 523264   ;;  %s589_s0 = inlined_call_operand.vmem [shape: bf16[10,256], index: 0, kind: input, shape index: {}]   ;;  %s590_s1 = inlined_call_operand.vmem [shape: bf16[64,10], index: 1, kind: input, shape index: {}]   ;;  %s591_s2 = inlined_call_operand.vmem [shape: bf16[64,64], index: 2, kind: input, shape index: {}]   ;;  %s592_s3 = inlined_call_operand.vmem [shape: f32[64,1], index: 3, kind: input, shape index: {}]   ;;  %s593_s4 = inlined_call_operand.vmem [shape: bf16[1,64], index: 4, kind: input, shape index: {}]   ;;  %s594_s5 = inlined_call_operand.<no memory space> [shape: f32[1,1], index: 5, kind: input, shape index: {}]   ;;  %s595_s6 = inlined_call_operand.vmem [shape: f32[1,256], index: 6, kind: output, shape index: {}]  }
   0x1   :  { %v442_v0 = vld [vmem:[%s589_s0 + $0x4] ss:$8 sps:$4 sm:$0x1f]   ;;  %115 = vmatprep.mubr.bf16.mxu0 %v457_v1  ;;  %245 = vmatprep.mubr.bf16.mxu1 %v457_v1  ;;  %v444_v2 = vld [vmem:[%s589_s0] ss:$8 sps:$4 sm:$0x1f]  }
   0x2   :  { %440 = vset.pattern.permute.xlu0 %v457_v1  ;;  %441 = vset.pattern.permute.xlu1 %v457_v1  ;;  %v78_v3 = vsel %vm76_vm0, %v444_v2, 0  ;;  %v445_v4 = vld [vmem:[%s590_s1] sm:$0xff]   ;;  %v446_v5 = vld [vmem:[%s590_s1 + $0x8] sm:$0xff]   ;;  %v447_v6 = vld [vmem:[%s590_s1 + $0x10] sm:$0xff]  }
   0x3   :  { %424 = vmatprep.subr.msk.bf16.mxu0 %vm76_vm0, %v442_v0  ;;  %v448_v7 = vld [vmem:[%s590_s1 + $0x18] sm:$0xff]   ;;  %v294_v8 = vld [vmem:[%s592_s3] sm:$0xff]  ;;  %v295_v9 = vld [vmem:[%s592_s3 + $0x8] sm:$0xff] }
   0x4   :  { %84 = vmatpush1.bf16.msra.mxu0 %v78_v3  ;;  %v296_v10 = vld [vmem:[%s592_s3 + $0x10] sm:$0xff]  ;;  %v302_v11 = vpack.c.bf16 %v295_v9, %v294_v8  ;;  %v297_v12 = vld [vmem:[%s592_s3 + $0x18] sm:$0xff]  ;;  %v298_v13 = vld [vmem:[%s592_s3 + $0x20] sm:$0xff] }
   0x5   :  { %v299_v14 = vld [vmem:[%s592_s3 + $0x28] sm:$0xff]  ;;  %v300_v16 = vld [vmem:[%s592_s3 + $0x30] sm:$0xff]  ;;  %v301_v17 = vld [vmem:[%s592_s3 + $0x38] sm:$0xff]  ;;  %v303_v18 = vpack.c.bf16 %v297_v12, %v296_v10 }
   0x6   :  { %v304_v15 = vpack.c.bf16 %v299_v14, %v298_v13  ;;  %308 = vperm.xlu0 %440, %v302_v11   ;;  %v305_v19 = vpack.c.bf16 %v301_v17, %v300_v16  ;;  %v449_v52 = vld [vmem:[%s591_s2] sm:$0xff]   ;;  %v450_v53 = vld [vmem:[%s591_s2 + $0x8] sm:$0xff]   ;;  %v451_v54 = vld [vmem:[%s591_s2 + $0x10] sm:$0xff]  }
   0x7   :  { %425 = vmatmul.mubr.msk.bf16.vlgmr.msra.gmra.mrb[0].mxu0 %vm63_vm1, %v445_v4  ;;  %v452_v55 = vld [vmem:[%s591_s2 + $0x18] sm:$0xff]  }
   0x8   :  { %125 = vmatprep.mubr.bf16.mxu0 %v457_v1  ;;  %318 = vperm.xlu1 %441, %v304_v15  }
   0xa   :  { %313 = vperm.xlu0 %440, %v303_v18  }
   0xc   :  { %323 = vperm.xlu1 %441, %v305_v19  }
   0xf   :  { %426 = vmatmul.mubr.msk.bf16.gmra.mrb[4].mxu0 %vm63_vm1, %v446_v5 }
  0x10   :  { %135 = vmatprep.mubr.bf16.mxu0 %v457_v1 }
  0x17   :  { %427 = vmatmul.mubr.msk.bf16.gmra.mrb[8].mxu0 %vm63_vm1, %v447_v6 }
  0x18   :  { %145 = vmatprep.mubr.bf16.mxu0 %v457_v1 }
  0x1f   :  { %428 = vmatmul.mubr.msk.bf16.gmra.mrb[12].mxu0 %vm63_vm1, %v448_v7 }
  0x20   :  { %380 = vmatprep.mubr.bf16.mxu0 %v457_v1 }
  0x85   :  { %v309_v58 = vpop.permute.xlu0 %308 }
  0x87   :  { %v319_v17 = vpop.permute.xlu1 %318 }
  0x89   :  { %v314_v6 = vpop.permute.xlu0 %313 }
  0xda   :  { %v117_v20 = vpop.f32.mrb[0].mxu0 }
  0xdb   :  { %v119_v21 = vpop.f32.mrb[1].mxu0 }
  0xdc   :  { %v121_v22 = vpop.f32.mrb[2].mxu0 }
  0xdd   :  { %v156_v23 = vpack.c.bf16 %v121_v22, %v117_v20  ;;  %v123_v24 = vpop.f32.mrb[3].mxu0 }
  0xde   :  { %v157_v25 = vpack.c.bf16 %v123_v24, %v119_v21 }
  0xdf   :  { %v164_v27 = vmax.bf16 %v457_v1, %v156_v23 }
  0xe0   :  { %v165_v26 = vmax.bf16 %v457_v1, %v157_v25 }
  0xe2   :  { %v127_v28 = vpop.f32.mrb[4].mxu0  ;;  %213 = vmatprep.subr.bf16.mxu1 %v165_v26 }
  0xe3   :  { %v129_v29 = vpop.f32.mrb[5].mxu0  ;;  %214 = vmatpush1.bf16.msra.mxu1 %v164_v27 }
  0xe4   :  { %v131_v30 = vpop.f32.mrb[6].mxu0 }
  0xe5   :  { %v158_v31 = vpack.c.bf16 %v131_v30, %v127_v28  ;;  %v133_v32 = vpop.f32.mrb[7].mxu0 }
  0xe6   :  { %v159_v33 = vpack.c.bf16 %v133_v32, %v129_v29 }
  0xe7   :  { %v166_v35 = vmax.bf16 %v457_v1, %v158_v31  ;;  %v324_v31 = vpop.permute.xlu1 %323 }
  0xe8   :  { %v167_v34 = vmax.bf16 %v457_v1, %v159_v33 }
  0xea   :  { %v137_v36 = vpop.f32.mrb[8].mxu0  ;;  %215 = vmatprep.subr.bf16.mxu1 %v167_v34 }
  0xeb   :  { %v139_v37 = vpop.f32.mrb[9].mxu0  ;;  %216 = vmatpush1.bf16.msra.mxu1 %v166_v35 }
  0xec   :  { %v141_v38 = vpop.f32.mrb[10].mxu0 }
  0xed   :  { %v160_v39 = vpack.c.bf16 %v141_v38, %v137_v36  ;;  %v143_v40 = vpop.f32.mrb[11].mxu0  ;;  %v344_v38 = vstv %s594_s5 }
  0xee   :  { %v161_v41 = vpack.c.bf16 %v143_v40, %v139_v37  ;;  %v342_v37 = vld [vmem:[%s593_s4] sm:$0x1] }
  0xef   :  { %v168_v43 = vmax.bf16 %v457_v1, %v160_v39 }
  0xf0   :  { %v169_v42 = vmax.bf16 %v457_v1, %v161_v41 }
  0xf2   :  { %v147_v44 = vpop.f32.mrb[12].mxu0  ;;  %217 = vmatprep.subr.bf16.mxu1 %v169_v42 }
  0xf3   :  { %v149_v45 = vpop.f32.mrb[13].mxu0  ;;  %218 = vmatpush1.bf16.msra.mxu1 %v168_v43 }
  0xf4   :  { %v151_v46 = vpop.f32.mrb[14].mxu0 }
  0xf5   :  { %v162_v47 = vpack.c.bf16 %v151_v46, %v147_v44  ;;  %v153_v48 = vpop.f32.mrb[15].mxu0  ;;  %v397_v46 = vlaneseq }
  0xf6   :  { %v163_v49 = vpack.c.bf16 %v153_v48, %v149_v45 }
  0xf7   :  { %v170_v51 = vmax.bf16 %v457_v1, %v162_v47  ;;  %v398_v48 = vshrl.u32 %v397_v46, 7  ;;  %vm411_vm3 = vcmp.lt.s32.totalorder %v397_v46, 256 }
  0xf8   :  { %v171_v50 = vmax.bf16 %v457_v1, %v163_v49 }
  0xfa   :  { %219 = vmatprep.subr.bf16.mxu1 %v171_v50 }
  0xfb   :  { %220 = vmatpush1.bf16.msra.mxu1 %v170_v51 }
  0xfe   :  { %433 = vmatmul.mubr.msk.bf16.vlgmr.msra.gmra.mrb[0].mxu1 %vm200_vm2, %v449_v52 }
  0xff   :  { %255 = vmatprep.mubr.bf16.mxu1 %v457_v1 }
 0x106   :  { %434 = vmatmul.mubr.msk.bf16.gmra.mrb[4].mxu1 %vm200_vm2, %v450_v53 }
 0x107   :  { %265 = vmatprep.mubr.bf16.mxu1 %v457_v1 }
 0x10e   :  { %435 = vmatmul.mubr.msk.bf16.gmra.mrb[8].mxu1 %vm200_vm2, %v451_v54 }
 0x10f   :  { %275 = vmatprep.mubr.bf16.mxu1 %v457_v1 }
 0x116   :  { %436 = vmatmul.mubr.msk.bf16.gmra.mrb[12].mxu1 %vm200_vm2, %v452_v55 }
 0x1d1   :  { %v247_v56 = vpop.f32.mrb[0].mxu1 }
 0x1d2   :  { %v249_v57 = vpop.f32.mrb[1].mxu1 }
 0x1d3   :  { %v251_v59 = vpop.f32.mrb[2].mxu1 }
 0x1d4   :  { %v286_v60 = vpack.c.bf16 %v251_v59, %v247_v56  ;;  %v253_v61 = vpop.f32.mrb[3].mxu1 }
 0x1d5   :  { %v287_v62 = vpack.c.bf16 %v253_v61, %v249_v57 }
 0x1d6   :  { %v326_v63 = vadd.bf16 %v309_v58, %v286_v60 }
 0x1d7   :  { %v327_v0 = vadd.bf16 %v309_v58, %v287_v62 }
 0x1d8   :  { %v334_v4 = vmax.bf16 %v457_v1, %v326_v63 }
 0x1d9   :  { %v257_v2 = vpop.f32.mrb[4].mxu1  ;;  %v335_v3 = vmax.bf16 %v457_v1, %v327_v0 }
 0x1da   :  { %v259_v5 = vpop.f32.mrb[5].mxu1 }
 0x1db   :  { %v261_v7 = vpop.f32.mrb[6].mxu1  ;;  %348 = vmatprep.subr.bf16.mxu0 %v335_v3 }
 0x1dc   :  { %v288_v8 = vpack.c.bf16 %v261_v7, %v257_v2  ;;  %v263_v9 = vpop.f32.mrb[7].mxu1  ;;  %349 = vmatpush1.bf16.msra.mxu0 %v334_v4 }
 0x1dd   :  { %v289_v10 = vpack.c.bf16 %v263_v9, %v259_v5 }
 0x1de   :  { %v328_v11 = vadd.bf16 %v314_v6, %v288_v8 }
 0x1df   :  { %v329_v12 = vadd.bf16 %v314_v6, %v289_v10 }
 0x1e0   :  { %v336_v15 = vmax.bf16 %v457_v1, %v328_v11 }
 0x1e1   :  { %v267_v13 = vpop.f32.mrb[8].mxu1  ;;  %v337_v14 = vmax.bf16 %v457_v1, %v329_v12 }
 0x1e2   :  { %v269_v16 = vpop.f32.mrb[9].mxu1 }
 0x1e3   :  { %v271_v18 = vpop.f32.mrb[10].mxu1  ;;  %350 = vmatprep.subr.bf16.mxu0 %v337_v14 }
 0x1e4   :  { %v290_v19 = vpack.c.bf16 %v271_v18, %v267_v13  ;;  %v273_v20 = vpop.f32.mrb[11].mxu1  ;;  %351 = vmatpush1.bf16.msra.mxu0 %v336_v15 }
 0x1e5   :  { %v291_v21 = vpack.c.bf16 %v273_v20, %v269_v16 }
 0x1e6   :  { %v330_v22 = vadd.bf16 %v319_v17, %v290_v19 }
 0x1e7   :  { %v331_v23 = vadd.bf16 %v319_v17, %v291_v21 }
 0x1e8   :  { %v338_v26 = vmax.bf16 %v457_v1, %v330_v22 }
 0x1e9   :  { %v277_v24 = vpop.f32.mrb[12].mxu1  ;;  %v339_v25 = vmax.bf16 %v457_v1, %v331_v23 }
 0x1ea   :  { %v279_v27 = vpop.f32.mrb[13].mxu1 }
 0x1eb   :  { %v281_v28 = vpop.f32.mrb[14].mxu1  ;;  %352 = vmatprep.subr.bf16.mxu0 %v339_v25 }
 0x1ec   :  { %v292_v29 = vpack.c.bf16 %v281_v28, %v277_v24  ;;  %v283_v30 = vpop.f32.mrb[15].mxu1  ;;  %353 = vmatpush1.bf16.msra.mxu0 %v338_v26 }
 0x1ed   :  { %v293_v32 = vpack.c.bf16 %v283_v30, %v279_v27 }
 0x1ee   :  { %v332_v33 = vadd.bf16 %v324_v31, %v292_v29 }
 0x1ef   :  { %v333_v34 = vadd.bf16 %v324_v31, %v293_v32 }
 0x1f0   :  { %v340_v36 = vmax.bf16 %v457_v1, %v332_v33 }
 0x1f1   :  { %v341_v35 = vmax.bf16 %v457_v1, %v333_v34  ;;  %v458_v1 = vmov 1966171168  }
 0x1f2   :  { %v395_v45 = vunpack.c.l.s4 %v458_v1 }
 0x1f3   :  { %354 = vmatprep.subr.bf16.mxu0 %v341_v35 }
 0x1f4   :  { %355 = vmatpush1.bf16.msra.mxu0 %v340_v36  ;;  %v396_v47 = vunpack.c.0.s8 %v395_v45 }
 0x1f6   :  { %v399_v50 = vsub.s32 %v396_v47, %v398_v48 }
 0x1f7   :  { %437 = vmatmul.mubr.msk.bf16.vlgmr.msra.gmra.mrb[16].mxu0 %vm200_vm2, %v342_v37 }
 0x2ca   :  { %v382_v39 = vpop.f32.mrb[16].mxu0 }
 0x2cb   :  { %v383_v40 = vadd.f32 %v382_v39, %v344_v38  ;;  %v384_v41 = vpop.f32.mrb[17].mxu0 }
 0x2cc   :  { %v385_v42 = vadd.f32 %v384_v41, %v344_v38  ;;  %v386_v43 = vpop.f32.mrb[18].mxu0 }
 0x2cd   :  { %453 = vtanh.f32 %v383_v40  ;;  %v387_v44 = vpop.f32.mrb[19].mxu0 }
 0x2ce   :  { %455 = vtanh.f32 %v385_v42 }
 0x2d7   :  { %v454_v49 = vpop.eup %453 }
 0x2d8   :  { %v456_v51 = vpop.eup %455 }
 0x2d9   :  { %v393_v52 = vcombine.low %v454_v49, %v456_v51 }
 0x2db   :  { %v400_v53 = vrot.slane %v393_v52, %v399_v50 }
 0x2dd   :  { %v407_v54 = vrot.slane %v400_v53, %v399_v50 }
 0x2df   :  { %413 = vst.msk [vmem:[%s595_s6] sm:$0x3] %vm411_vm3, %v407_v54 }

</bundles_post_ra>
